<compile_context>
chip_gen: v7x
topology: tpu7x:2x2x1
jax: 0.10.0
libtpu: 0.0.40
codegen_flags: <defaults>
</compile_context>

<pallas_src>
import math

import jax
import jax.numpy as jnp
from jax.experimental import pallas as pl
from jax.experimental.pallas import tpu as pltpu


def make_positional_encoding(d_model: int = 10, max_len: int = 5000) -> jnp.ndarray:
    """Reproduces the PyTorch __init__ buffer exactly. Returns (max_len, 1, d_model) f32."""
    position = jnp.arange(0, max_len, dtype=jnp.float32)[:, None]          # (max_len, 1)
    sin_div = jnp.exp(
        jnp.arange(0, d_model, 2, dtype=jnp.float32) * (-math.log(10000.0) / d_model)
    )
    if d_model % 2 == 0:
        cos_div = sin_div
    else:
        cos_div = jnp.exp(
            jnp.arange(0, d_model - 1, 2, dtype=jnp.float32) * (-math.log(10000.0) / d_model)
        )
    sin_part = jnp.sin(position * sin_div)                                  # (max_len, ceil(d/2))
    cos_part = jnp.cos(position * cos_div)                                  # (max_len, floor(d/2))

    pe = jnp.zeros((max_len, d_model), dtype=jnp.float32)
    pe = pe.at[:, 0::2].set(sin_part)
    pe = pe.at[:, 1::2].set(cos_part)
    # .unsqueeze(0).transpose(0, 1)  ->  (max_len, 1, d_model)
    return pe[:, None, :]


def _add_pe_kernel(x_ref, pe_ref, o_ref):
    # x_ref / o_ref: (ts, batch, d_model) VMEM tiles; pe_ref: (ts, 1, d_model).
    # Cast only the small pe tile in-kernel (free; the kernel is HBM-bound) and
    # broadcast-add across the batch (sublane) axis — plain VPU elementwise add.
    o_ref[...] = x_ref[...] + pe_ref[...].astype(x_ref.dtype)


def _round_up(n: int, m: int) -> int:
    return ((n + m - 1) // m) * m


def _sublane_pack(itemsize: int) -> int:
    # Second-minor dim padding granularity in VMEM tiles.
    if itemsize >= 4:
        return 8
    if itemsize == 2:
        return 16
    return 32


def _padded_block_bytes(ts: int, batch: int, d_model: int, itemsize: int) -> int:
    """VMEM footprint of one (ts, batch, d_model) block, including tile padding."""
    pad_b = _round_up(max(1, batch), _sublane_pack(itemsize))
    pad_d = _round_up(max(1, d_model), 128)
    return ts * pad_b * pad_d * itemsize


def _pick_seq_tile(seq_len: int, batch: int, d_model: int, itemsize: int,
                   max_rows: int | None = None,
                   target_block_bytes: int = 2 << 20) -> int:
    """Largest seq tile (multiple of 8) whose *padded* x block is ~<= target_block_bytes.

    ~2 MiB per block keeps double-buffered x + out + pe well inside the default
    scoped VMEM on all generations (16 MiB v5e / 32 MiB v6e, v7x) while still
    amortizing the ~0.35 us per-grid-step overhead.
    """
    row_bytes = _padded_block_bytes(1, batch, d_model, itemsize)
    budget_rows = max(8, (target_block_bytes // row_bytes) // 8 * 8)
    ts = min(_round_up(seq_len, 8), budget_rows)
    if max_rows is not None:
        ts = min(ts, max(8, (max_rows // 8) * 8))
    ts = max(8, ts)
    # v7x has 2 TensorCores: prefer >= 2 grid steps so both participate
    # (harmless on single-TC v5e/v6e; skipped when the sequence is too short).
    while ts > 8 and pl.cdiv(seq_len, ts) < 2:
        ts = max(8, ((ts // 2) // 8) * 8)
    return ts


def positional_encoding_forward(x: jnp.ndarray, pe: jnp.ndarray, *,
                                seq_block: int | None = None,
                                donate_x: bool = False) -> jnp.ndarray:
    """x: (seq_len, batch, d_model); pe: (max_len, 1, d_model). Returns x + pe[:seq_len]."""
    seq_len, batch, d_model = x.shape
    max_len = pe.shape[0]
    assert pe.shape == (max_len, 1, d_model)
    assert seq_len <= max_len, "seq_len must not exceed max_len (same as the PyTorch module)"

    ts = _pick_seq_tile(seq_len, batch, d_model, x.dtype.itemsize, max_rows=seq_block)
    grid = (pl.cdiv(seq_len, ts),)

    # Full-batch blocks: each x/out block is one contiguous HBM slab; the pe
    # block keeps its size-1 batch axis and is broadcast inside the kernel.
    x_spec = pl.BlockSpec((ts, batch, d_model), lambda i: (i, 0, 0))
    pe_spec = pl.BlockSpec((ts, 1, d_model), lambda i: (i, 0, 0))
    out_spec = pl.BlockSpec((ts, batch, d_model), lambda i: (i, 0, 0))

    # Double-buffered VMEM footprint (padded): 2 x (x + out + pe) blocks.
    x_bytes = _padded_block_bytes(ts, batch, d_model, x.dtype.itemsize)
    pe_bytes = _padded_block_bytes(ts, 1, d_model, pe.dtype.itemsize)
    footprint = 2 * (2 * x_bytes + pe_bytes)

    cp_kwargs = dict(dimension_semantics=("parallel",))
    if footprint > (12 << 20):
        # Only needed if a caller forces an oversized seq_block; stay under
        # v7x's 64 MiB physical VMEM with headroom.
        cp_kwargs["vmem_limit_bytes"] = min(int(footprint * 3) // 2, 48 << 20)

    kwargs = {}
    if donate_x:
        # Only worthwhile when the caller actually donates x; otherwise XLA
        # inserts a defensive copy and this costs more than it saves.
        kwargs["input_output_aliases"] = {0: 0}

    return pl.pallas_call(
        _add_pe_kernel,
        out_shape=jax.ShapeDtypeStruct(x.shape, x.dtype),
        grid=grid,
        in_specs=[x_spec, pe_spec],
        out_specs=out_spec,
        compiler_params=pltpu.CompilerParams(**cp_kwargs),
        **kwargs,
    )(x, pe)


if __name__ == "__main__":
    key = jax.random.PRNGKey(0)

    # Case 1: module defaults (d_model=10, max_len=5000), toy shape (8, 2, 10).
    d_model, max_len = 10, 5000
    pe = make_positional_encoding(d_model=d_model, max_len=max_len)
    x1 = jax.random.normal(key, (8, 2, d_model), dtype=jnp.float32)
    out1 = jax.block_until_ready(positional_encoding_forward(x1, pe))
    ref1 = x1 + pe[:8]
    assert out1.shape == x1.shape and out1.dtype == x1.dtype
    assert jnp.allclose(out1, ref1, atol=1e-6, rtol=1e-6)

    # Case 2: lane-dense d_model (128), multi-step seq grid, non-divisible
    # seq_len (masked trailing block).
    d2, m2 = 128, 256
    pe2 = make_positional_encoding(d_model=d2, max_len=m2)
    k1, k2 = jax.random.split(key)
    x2 = jax.random.normal(k1, (40, 4, d2), dtype=jnp.float32)
    out2 = jax.block_until_ready(positional_encoding_forward(x2, pe2, seq_block=16))
    ref2 = x2 + pe2[:40]
    assert out2.shape == x2.shape and out2.dtype == x2.dtype
    assert jnp.allclose(out2, ref2, atol=1e-6, rtol=1e-6)

    # Case 3: bf16 activations with the f32 pe buffer — the cast happens on the
    # small pe tile inside the kernel (no wrapper-side full-table cast pass).
    d3, m3 = 256, 64
    pe3 = make_positional_encoding(d_model=d3, max_len=m3)
    x3 = jax.random.normal(k2, (24, 8, d3), dtype=jnp.bfloat16)
    out3 = jax.block_until_ready(positional_encoding_forward(x3, pe3))
    ref3 = x3 + pe3[:24].astype(jnp.bfloat16)
    assert out3.shape == x3.shape and out3.dtype == x3.dtype
    assert jnp.allclose(out3.astype(jnp.float32), ref3.astype(jnp.float32),
                        atol=1e-2, rtol=1e-2)

    print("KERNEL_OK")
</pallas_src>

<mosaic_0001>
module attributes {stable_mosaic.version = 11 : i64} {
  func.func @_add_pe_kernel(%arg0: i32, %arg1: memref<8x2x10xf32, #tpu.memory_space<vmem>>, %arg2: memref<8x1x10xf32, #tpu.memory_space<vmem>>, %arg3: memref<8x2x10xf32, #tpu.memory_space<vmem>>) attributes {dimension_semantics = [#tpu.dimension_semantics<parallel>], iteration_bounds = array<i64: 1>, scalar_prefetch = 0 : i64, scratch_operands = 0 : i64, tpu.core_type = #tpu.core_type<tc>, window_params = [{transform_indices = @transform_0, window_bounds = array<i64: 8, 2, 10>}, {transform_indices = @transform_1, window_bounds = array<i64: 8, 1, 10>}, {transform_indices = @transform_2, window_bounds = array<i64: 8, 2, 10>}]} {
    %c0 = arith.constant 0 : index
    %c0_0 = arith.constant 0 : index
    %c0_1 = arith.constant 0 : index
    %0 = vector.load %arg1[%c0, %c0_0, %c0_1] : memref<8x2x10xf32, #tpu.memory_space<vmem>>, vector<8x2x10xf32>
    %c0_2 = arith.constant 0 : index
    %c0_3 = arith.constant 0 : index
    %c0_4 = arith.constant 0 : index
    %1 = vector.load %arg2[%c0_2, %c0_3, %c0_4] : memref<8x1x10xf32, #tpu.memory_space<vmem>>, vector<8x1x10xf32>
    %2 = vector.broadcast %1 : vector<8x1x10xf32> to vector<8x2x10xf32>
    %3 = arith.addf %0, %2 : vector<8x2x10xf32>
    %c0_5 = arith.constant 0 : index
    %c0_6 = arith.constant 0 : index
    %c0_7 = arith.constant 0 : index
    %4 = vector.load %arg3[%c0_5, %c0_6, %c0_7] : memref<8x2x10xf32, #tpu.memory_space<vmem>>, vector<8x2x10xf32>
    tpu.vector_store %arg3[%c0_5, %c0_6, %c0_7], %3 {strides = array<i32>} : memref<8x2x10xf32, #tpu.memory_space<vmem>>, vector<8x2x10xf32>,
    return
  }
  func.func @transform_0(%arg0: i32) -> (i32, i32, i32) {
    %c0_i32 = arith.constant 0 : i32
    %c0_i32_0 = arith.constant 0 : i32
    %c0_i32_1 = arith.constant 0 : i32
    return %arg0, %c0_i32, %c0_i32_0 : i32, i32, i32
  }
  func.func @transform_1(%arg0: i32) -> (i32, i32, i32) {
    %c0_i32 = arith.constant 0 : i32
    %c0_i32_0 = arith.constant 0 : i32
    %c0_i32_1 = arith.constant 0 : i32
    return %arg0, %c0_i32, %c0_i32_0 : i32, i32, i32
  }
  func.func @transform_2(%arg0: i32) -> (i32, i32, i32) {
    %c0_i32 = arith.constant 0 : i32
    %c0_i32_0 = arith.constant 0 : i32
    %c0_i32_1 = arith.constant 0 : i32
    return %arg0, %c0_i32, %c0_i32_0 : i32, i32, i32
  }
}

</mosaic_0001>

<bundles_post_ra>
// kernel: tpu_custom_call.1
= control target key start
LH: loop header
LB: loop body
LE: loop exit
PB: predicated region body
PF: predicated region fallthrough
CT: control target
= control target key end

     0   :  { %vm84_vm0 = vcmask 74752   ;;  %s230_s0 = inlined_call_operand.vmem [shape: f32[8,2,10], index: 0, kind: input, shape index: {}]   ;;  %s231_s1 = inlined_call_operand.vmem [shape: f32[5000,1,10], index: 1, kind: input, shape index: {}]   ;;  %s232_s2 = inlined_call_operand.hbm [shape: f32[8,2,10], index: 2, kind: output, shape index: {}]  }
   0x1   :  { %v12_v0 = vld [vmem:[%s230_s0] sm:$0x3]  ;;  %v13_v3 = vld [vmem:[%s230_s0 + $0x2] sm:$0x3]  ;;  %v14_v5 = vld [vmem:[%s230_s0 + $0x4] sm:$0x3] }
   0x2   :  { %v109_v1 = vld [vmem:[%s231_s1] ss:$0 sm:$0xff]  ;;  %v110_v4 = vld [vmem:[%s231_s1 + $0x1] ss:$0 sm:$0xff]  ;;  %v111_v7 = vld [vmem:[%s231_s1 + $0x2] ss:$0 sm:$0xff] }
   0x3   :  { %v76_v2 = vadd.f32 %v109_v1, %v12_v0  ;;  %v77_v6 = vadd.f32 %v110_v4, %v13_v3  ;;  %v15_v8 = vld [vmem:[%s230_s0 + $0x6] sm:$0x3]  ;;  %v112_v9 = vld [vmem:[%s231_s1 + $0x3] ss:$0 sm:$0xff]  ;;  %v78_v10 = vadd.f32 %v111_v7, %v14_v5  ;;  %v16_v12 = vld [vmem:[%s230_s0 + $0x8] sm:$0x3] }
   0x4   :  { %v79_v11 = vadd.f32 %v112_v9, %v15_v8  ;;  %v113_v13 = vld [vmem:[%s231_s1 + $0x4] ss:$0 sm:$0xff]  ;;  %v17_v14 = vld [vmem:[%s230_s0 + $0xa] sm:$0x3]  ;;  %v114_v16 = vld [vmem:[%s231_s1 + $0x5] ss:$0 sm:$0xff] }
   0x5   :  { %85 = vst.msk [vmem:[#allocation2] sm:$0x3] %vm84_vm0, %v76_v2  ;;  %86 = vst.msk [vmem:[#allocation2 + $0x2] sm:$0x3] %vm84_vm0, %v77_v6  ;;  %v80_v15 = vadd.f32 %v113_v13, %v16_v12  ;;  %v18_v17 = vld [vmem:[%s230_s0 + $0xc] sm:$0x3]  ;;  %v81_v19 = vadd.f32 %v114_v16, %v17_v14 }
   0x6   :  { %v115_v18 = vld [vmem:[%s231_s1 + $0x6] ss:$0 sm:$0xff]  ;;  %87 = vst.msk [vmem:[#allocation2 + $0x4] sm:$0x3] %vm84_vm0, %v78_v10  ;;  %88 = vst.msk [vmem:[#allocation2 + $0x6] sm:$0x3] %vm84_vm0, %v79_v11 }
   0x7   :  { %v82_v20 = vadd.f32 %v115_v18, %v18_v17  ;;  %v19_v21 = vld [vmem:[%s230_s0 + $0xe] sm:$0x3]  ;;  %v116_v22 = vld [vmem:[%s231_s1 + $0x7] ss:$0 sm:$0xff] }
   0x8   :  { %7 = vsyncpa [#allocation3], 0  ;;  %89 = vst.msk [vmem:[#allocation2 + $0x8] sm:$0x3] %vm84_vm0, %v80_v15  ;;  %v83_v23 = vadd.f32 %v116_v22, %v19_v21  ;;  %s144_s13 = smov [#allocation2]  }
   0x9   :  { %s98_s14 = sshll.u32 %s144_s13, 4  ;;  %90 = vst.msk [vmem:[#allocation2 + $0xa] sm:$0x3] %vm84_vm0, %v81_v19  ;;  %91 = vst.msk [vmem:[#allocation2 + $0xc] sm:$0x3] %vm84_vm0, %v82_v20  ;;  %s99_s14 = int_to_ptr.vmem [resolvable:$true] %s98_s14 }
   0xa   :  { %92 = vst.msk [vmem:[#allocation2 + $0xe] sm:$0x3] %vm84_vm0, %v83_v23  ;;  %s120_s15 = scalar_lea.vmem %s99_s14, 256  ;;  %p125_p1 = scmp.lt.s32.totalorder %s99_s14, %s99_s14 }
   0xb   :  { %p121_p0 = scmp.ne.s32.totalorder %s99_s14, %s120_s15  ;;  %p126_p2 = scmp.lt.s32.totalorder %s120_s15, %s120_s15 }
   0xd   :  { %p127_p3 = por %p126_p2, %p125_p1 }
   0xf   :  { %p128_p4 = pnand %p127_p3, %p121_p0 }
  0x11   :  { %131 = shalt.err (!%p128_p4)
}
  0x12   :  { %s132_s16 = scalar_lea.hbm %s232_s2, 256 }
  0x13   :  { %p133_p5 = scmp.ne.s32.totalorder %s232_s2, %s132_s16  ;;  %p136_p6 = scmp.lt.u32.totalorder %s132_s16, %s232_s2 }
  0x15   :  { %p138_p7 = pnand %p136_p6, %p133_p5 }
  0x17   :  { %141 = shalt.err (!%p138_p7)
}
  0x18   :  { %s145_s21 = smov 32   ;;  %s146_s22 = smov 2  }
  0x19   :  { %104 = dma.vmem_to_hbm [thread:$0]  %s99_s14, 256, %s232_s2, [#allocation3], %s145_s21, %s145_s21, %s146_s22  }
  0x1a   :  { %142 = dma.done.wait [#allocation3], 256  }
  0x1b   :  { %143 = vsyncadd [#allocation3], 4294967040 }
  0x1c   :  { %108 = vsyncpa [#allocation3], 1 }

</bundles_post_ra>
